<compile_context>
chip_gen: v7x
topology: tpu7x:2x2x1
jax: 0.10.0
libtpu: 0.0.40
codegen_flags: <defaults>
</compile_context>

<pallas_src>
import math
import jax
import jax.numpy as jnp
from jax import lax
from jax.experimental import pallas as pl
from jax.experimental.pallas import tpu as pltpu

# config.NUM_ANCHORS is not given in the reference; RetinaFace-style models use 2.
NUM_ANCHORS = 2
NUM_CLASSES = 6
OUT_CHANNEL = 64

N_CLS = NUM_ANCHORS * NUM_CLASSES   # 12
N_OBB = NUM_ANCHORS * 8             # 16
N_ANG = NUM_ANCHORS * 1             # 2
N_RAW = N_CLS + N_OBB + N_ANG       # 30
N_PAD = 32                          # lane-padded fused output width


def _round_up(x, m):
    return ((x + m - 1) // m) * m


# ----------------------------------------------------------------------------
# Pallas kernel: fused [SSH-final-ReLU -> bf16 cast -> 1x1-conv heads] for one
# row tile of the concatenated multi-level feature matrix.
#   lvl_ref : (num_tiles,) int32 in SMEM (scalar prefetch; used in index_maps)
#   x_ref   : (tm, C)        f32 pre-activation feature rows
#   w_ref   : (1, C, 32)     bf16 stacked per-level fused head weight
#   b_ref   : (1, 1, 32)     f32  stacked per-level fused head bias
#   o_ref   : (tm, 32)       f32  [cls logits | tanh(obb) | sigmoid(ang)*2pi | pad]
# ----------------------------------------------------------------------------
def _heads_kernel(lvl_ref, x_ref, w_ref, b_ref, o_ref):
    del lvl_ref  # only used by the index_maps
    # Fused SSH final ReLU + cast to bf16 for the MXU (VPU max is f32-safe on
    # v5e too; activations below stay in f32).
    x = jnp.maximum(x_ref[...], 0.0).astype(jnp.bfloat16)       # (tm, C)
    w = w_ref[0]                                                 # (C, 32) bf16
    y = jnp.dot(x, w, preferred_element_type=jnp.float32) + b_ref[0]  # (tm, 32)
    col = lax.broadcasted_iota(jnp.int32, y.shape, 1)
    y = jnp.where(
        col < N_CLS, y,                                       # raw class logits
        jnp.where(col < N_CLS + N_OBB, jnp.tanh(y),           # OBB offsets
                  jax.nn.sigmoid(y) * (2.0 * math.pi)))       # angle in [0, 2pi]
    o_ref[...] = y


def run_heads_all_levels(feats_preact, head_params, target_tm=1024):
    """Apply ReLU + the three heads to all pyramid levels in one Pallas call.

    `feats_preact` are the SSH outputs BEFORE the final ReLU (f32 NHWC); the
    ReLU is applied inside the kernel.
    """
    C = feats_preact[0].shape[-1]
    shapes = [f.shape for f in feats_preact]
    ms = [bb * hh * ww for (bb, hh, ww, _) in shapes]

    # Row tile: big (up to `target_tm`) but no larger than the largest level
    # needs; multiple of 16 so f32/bf16 sublane packing rules are both met.
    tm = min(_round_up(target_tm, 16), _round_up(max(ms), 16))

    # Stack + pad per-level head weights into one (L, C, 32) bf16 weight and
    # one (L, 1, 32) f32 bias. Column order: [cls(12) | obb(16) | ang(2) | 0s].
    w_stack, b_stack = [], []
    for hp in head_params:
        w = jnp.concatenate([hp["wc"], hp["wo"], hp["wa"]], axis=1)
        b = jnp.concatenate([hp["bc"], hp["bo"], hp["ba"]], axis=1)
        w_stack.append(jnp.pad(w, ((0, 0), (0, N_PAD - N_RAW))))
        b_stack.append(jnp.pad(b, ((0, 0), (0, N_PAD - N_RAW))))
    w_stack = jnp.stack(w_stack).astype(jnp.bfloat16)   # (L, C, 32)
    b_stack = jnp.stack(b_stack).astype(jnp.float32)    # (L, 1, 32)

    # Flatten each level to (M_l, C) f32, pad M_l up to a multiple of tm, and
    # concatenate.  Per-tile level ids drive the weight index_map.
    padded_ms = [_round_up(m, tm) for m in ms]
    offsets = [0]
    for pm in padded_ms[:-1]:
        offsets.append(offsets[-1] + pm)
    total = sum(padded_ms)

    x_rows, lvl_ids = [], []
    for lvl, (f, m, pm) in enumerate(zip(feats_preact, ms, padded_ms)):
        xr = f.reshape(m, C)
        if pm > m:
            xr = jnp.pad(xr, ((0, pm - m), (0, 0)))
        x_rows.append(xr)
        lvl_ids += [lvl] * (pm // tm)
    x_all = jnp.concatenate(x_rows, axis=0).astype(jnp.float32)  # (total, C)
    lvl_ids = jnp.asarray(lvl_ids, dtype=jnp.int32)              # (total // tm,)

    cost = pl.CostEstimate(
        flops=2 * total * C * N_PAD,
        transcendentals=3 * total * N_PAD,  # tanh + exp + recip (upper bound)
        bytes_accessed=(total * C * 4) + (total * N_PAD * 4)
        + int(w_stack.size) * 2 + int(b_stack.size) * 4,
    )

    out = pl.pallas_call(
        _heads_kernel,
        out_shape=jax.ShapeDtypeStruct((total, N_PAD), jnp.float32),
        grid_spec=pltpu.PrefetchScalarGridSpec(
            num_scalar_prefetch=1,
            grid=(total // tm,),
            in_specs=[
                pl.BlockSpec((tm, C), lambda i, lvl: (i, 0)),
                pl.BlockSpec((1, C, N_PAD), lambda i, lvl: (lvl[i], 0, 0)),
                pl.BlockSpec((1, 1, N_PAD), lambda i, lvl: (lvl[i], 0, 0)),
            ],
            out_specs=pl.BlockSpec((tm, N_PAD), lambda i, lvl: (i, 0)),
        ),
        compiler_params=pltpu.CompilerParams(
            dimension_semantics=("parallel",)),
        cost_estimate=cost,
    )(lvl_ids, x_all, w_stack, b_stack)

    # Split padded rows / lane padding and reshape exactly like PyTorch's
    # permute(0,2,3,1).contiguous().view(B, -1, K):
    #   (B*H*W, A*K) -> (B, H*W*A, K), assuming anchor-major 1x1-conv channels.
    cls_list, obb_list, ang_list = [], [], []
    for (bb, hh, ww, _), m, off in zip(shapes, ms, offsets):
        rows = out[off:off + m]
        n = hh * ww * NUM_ANCHORS
        cls_list.append(rows[:, :N_CLS].reshape(bb, n, NUM_CLASSES))
        obb_list.append(rows[:, N_CLS:N_CLS + N_OBB].reshape(bb, n, 8))
        ang_list.append(rows[:, N_CLS + N_OBB:N_RAW].reshape(bb, n, 1))
    logits = jnp.concatenate(cls_list, axis=1)
    obbs = jnp.concatenate(obb_list, axis=1)
    angs = jnp.concatenate(ang_list, axis=1)
    return logits, obbs, angs


# ----------------------------------------------------------------------------
# Plain-JAX glue: backbone / FPN / SSH stand-ins (definitions not provided in
# the reference source).
# ----------------------------------------------------------------------------
def conv2d(x, w, b, stride=1):
    y = lax.conv_general_dilated(
        x, w, (stride, stride), "SAME",
        dimension_numbers=("NHWC", "HWIO", "NHWC"))
    return y + b


def relu(x):
    return jnp.maximum(x, 0.0)


def upsample2x(x):
    return jnp.repeat(jnp.repeat(x, 2, axis=1), 2, axis=2)


def backbone(x, p):
    # TODO(synk): MobileNetV1 definition not provided; simplified strided-conv
    # stages producing feat1/feat2/feat3 with channels [64, 128, 256].
    h = relu(conv2d(x, *p["c1"], stride=2))
    h = relu(conv2d(h, *p["c2"], stride=2))
    feat1 = relu(conv2d(h, *p["c3"], stride=2))       # /8,  64 ch
    feat2 = relu(conv2d(feat1, *p["c4"], stride=2))   # /16, 128 ch
    feat3 = relu(conv2d(feat2, *p["c5"], stride=2))   # /32, 256 ch
    return feat1, feat2, feat3


def fpn(feats, p):
    # TODO(synk): FPN definition not provided; standard RetinaFace-style FPN
    # (lateral 1x1 + top-down add + 3x3 merge), without batchnorm.
    f1, f2, f3 = feats
    o1 = relu(conv2d(f1, *p["lat1"]))
    o2 = relu(conv2d(f2, *p["lat2"]))
    o3 = relu(conv2d(f3, *p["lat3"]))
    o2 = o2 + upsample2x(o3)
    o2 = relu(conv2d(o2, *p["merge2"]))
    o1 = o1 + upsample2x(o2)
    o1 = relu(conv2d(o1, *p["merge1"]))
    return o1, o2, o3


def ssh_preact(x, p):
    # TODO(synk): SSH definition not provided; standard SSH context module
    # (3x3 / 5x5 / 7x7 branches), without batchnorm.  NOTE: the final ReLU of
    # SSH is NOT applied here — it is fused into the Pallas heads kernel.
    c3 = conv2d(x, *p["conv3"])
    c5_1 = relu(conv2d(x, *p["conv5_1"]))
    c5 = conv2d(c5_1, *p["conv5_2"])
    c7 = conv2d(relu(conv2d(c5_1, *p["conv7_2"])), *p["conv7_3"])
    return jnp.concatenate([c3, c5, c7], axis=-1)


# ----------------------------------------------------------------------------
# Deterministic parameter initialization (synthetic weights).
# ----------------------------------------------------------------------------
def init_params(key):
    keys = iter(jax.random.split(key, 128))

    def w(shape, scale=0.05):
        return scale * jax.random.normal(next(keys), shape, jnp.float32)

    def conv_p(kh, kw, cin, cout):
        return (w((kh, kw, cin, cout)), w((cout,), 0.01))

    params = {
        "backbone": {
            "c1": conv_p(3, 3, 3, 16),
            "c2": conv_p(3, 3, 16, 32),
            "c3": conv_p(3, 3, 32, 64),
            "c4": conv_p(3, 3, 64, 128),
            "c5": conv_p(3, 3, 128, 256),
        },
        "fpn": {
            "lat1": conv_p(1, 1, 64, OUT_CHANNEL),
            "lat2": conv_p(1, 1, 128, OUT_CHANNEL),
            "lat3": conv_p(1, 1, 256, OUT_CHANNEL),
            "merge1": conv_p(3, 3, OUT_CHANNEL, OUT_CHANNEL),
            "merge2": conv_p(3, 3, OUT_CHANNEL, OUT_CHANNEL),
        },
        "ssh": [],
        "heads": [],
    }
    for _ in range(3):
        params["ssh"].append({
            "conv3": conv_p(3, 3, OUT_CHANNEL, OUT_CHANNEL // 2),
            "conv5_1": conv_p(3, 3, OUT_CHANNEL, OUT_CHANNEL // 4),
            "conv5_2": conv_p(3, 3, OUT_CHANNEL // 4, OUT_CHANNEL // 4),
            "conv7_2": conv_p(3, 3, OUT_CHANNEL // 4, OUT_CHANNEL // 4),
            "conv7_3": conv_p(3, 3, OUT_CHANNEL // 4, OUT_CHANNEL // 4),
        })
    for _ in range(3):
        # 1x1 conv weights stored as (C_in, C_out); biases as (1, C_out).
        # NOTE: column order within each head is assumed anchor-major
        # [anchor0(K cols), anchor1(K cols)], matching PyTorch's
        # permute(0,2,3,1).view(B,-1,K) flattening.
        params["heads"].append({
            "wc": w((OUT_CHANNEL, N_CLS)),
            "bc": w((1, N_CLS), 0.01),
            "wo": w((OUT_CHANNEL, N_OBB)),
            "bo": w((1, N_OBB), 0.01),
            "wa": w((OUT_CHANNEL, N_ANG)),
            "ba": w((1, N_ANG), 0.01),
        })
    return params


# ----------------------------------------------------------------------------
# RetinaBabyFace forward.
# ----------------------------------------------------------------------------
def retinababyface_forward(x_nchw, params):
    x = jnp.transpose(x_nchw, (0, 2, 3, 1))  # NCHW -> NHWC
    feats = backbone(x, params["backbone"])
    p3, p4, p5 = fpn(feats, params["fpn"])
    # SSH outputs WITHOUT the final ReLU; the ReLU is fused into the kernel.
    fmaps = [ssh_preact(f, sp) for f, sp in zip((p3, p4, p5), params["ssh"])]
    return run_heads_all_levels(fmaps, params["heads"])


if __name__ == "__main__":
    key = jax.random.PRNGKey(0)
    pkey, xkey = jax.random.split(key)
    params = init_params(pkey)

    # Small input: B=2, 3-channel 64x64 image -> pyramid levels 8x8 / 4x4 / 2x2.
    x = jax.random.normal(xkey, (2, 3, 64, 64), jnp.float32)

    logits, obbs, angs = jax.jit(retinababyface_forward)(x, params)
    jax.block_until_ready((logits, obbs, angs))

    N = (8 * 8 + 4 * 4 + 2 * 2) * NUM_ANCHORS
    assert logits.shape == (2, N, NUM_CLASSES)
    assert obbs.shape == (2, N, 8)
    assert angs.shape == (2, N, 1)
    assert bool(jnp.all(jnp.abs(obbs) <= 1.0))
    assert bool(jnp.all((angs >= 0.0) & (angs <= 2.0 * math.pi)))
    print("KERNEL_OK")
</pallas_src>

<mosaic_0001>
module attributes {stable_mosaic.version = 11 : i64} {
  func.func @_heads_kernel(%arg0: i32, %arg1: memref<3xi32, #tpu.memory_space<smem>>, %arg2: memref<128x64xf32, #tpu.memory_space<vmem>>, %arg3: memref<1x64x32xbf16, #tpu.memory_space<vmem>>, %arg4: memref<1x1x32xf32, #tpu.memory_space<vmem>>, %arg5: memref<128x32xf32, #tpu.memory_space<vmem>>) attributes {dimension_semantics = [#tpu.dimension_semantics<parallel>], iteration_bounds = array<i64: 3>, scalar_prefetch = 1 : i64, scratch_operands = 0 : i64, tpu.core_type = #tpu.core_type<tc>, window_params = [{transform_indices = @transform_0, window_bounds = array<i64: 128, 64>}, {transform_indices = @transform_1, window_bounds = array<i64: 1, 64, 32>}, {transform_indices = @transform_2, window_bounds = array<i64: 1, 1, 32>}, {transform_indices = @transform_3, window_bounds = array<i64: 128, 32>}]} {
    %c0 = arith.constant 0 : index
    %c0_0 = arith.constant 0 : index
    %0 = vector.load %arg2[%c0, %c0_0] : memref<128x64xf32, #tpu.memory_space<vmem>>, vector<128x64xf32>
    %cst = arith.constant 0.000000e+00 : f32
    %1 = vector.broadcast %cst : f32 to vector<128x64xf32>
    %2 = arith.maximumf %0, %1 : vector<128x64xf32>
    %3 = arith.truncf %2 : vector<128x64xf32> to vector<128x64xbf16>
    %c0_1 = arith.constant 0 : index
    %c0_2 = arith.constant 0 : index
    %c0_3 = arith.constant 0 : index
    %4 = vector.load %arg3[%c0_1, %c0_2, %c0_3] : memref<1x64x32xbf16, #tpu.memory_space<vmem>>, vector<1x64x32xbf16>
    %5 = vector.shape_cast %4 : vector<1x64x32xbf16> to vector<64x32xbf16>
    %cst_4 = arith.constant dense<0.000000e+00> : vector<128x32xf32>
    %6 = tpu.matmul %3, %5, %cst_4 {dimension_numbers = #tpu.dot_dimension_numbers<[1], [0], [0], [1], [0, 0, 1, 1], [], []>} : vector<128x64xbf16>, vector<64x32xbf16>, vector<128x32xf32> -> vector<128x32xf32>
    %c0_5 = arith.constant 0 : index
    %c0_6 = arith.constant 0 : index
    %c0_7 = arith.constant 0 : index
    %7 = vector.load %arg4[%c0_5, %c0_6, %c0_7] : memref<1x1x32xf32, #tpu.memory_space<vmem>>, vector<1x1x32xf32>
    %8 = vector.shape_cast %7 : vector<1x1x32xf32> to vector<1x32xf32>
    %9 = vector.broadcast %8 : vector<1x32xf32> to vector<128x32xf32>
    %10 = arith.addf %6, %9 : vector<128x32xf32>
    %11 = tpu.iota {dimensions = array<i32: 1>} : vector<128x32xi32>
    %c12_i32 = arith.constant 12 : i32
    %12 = vector.broadcast %c12_i32 : i32 to vector<128x32xi32>
    %13 = arith.cmpi slt, %11, %12 : vector<128x32xi32>
    %c28_i32 = arith.constant 28 : i32
    %14 = vector.broadcast %c28_i32 : i32 to vector<128x32xi32>
    %15 = arith.cmpi slt, %11, %14 : vector<128x32xi32>
    %16 = math.tanh %10 : vector<128x32xf32>
    %17 = arith.negf %10 : vector<128x32xf32>
    %18 = math.exp %17 : vector<128x32xf32>
    %cst_8 = arith.constant 1.000000e+00 : f32
    %19 = vector.broadcast %cst_8 : f32 to vector<128x32xf32>
    %20 = arith.addf %19, %18 : vector<128x32xf32>
    %21 = arith.divf %19, %20 : vector<128x32xf32>
    %cst_9 = arith.constant 6.28318548 : f32
    %22 = vector.broadcast %cst_9 : f32 to vector<128x32xf32>
    %23 = arith.mulf %21, %22 : vector<128x32xf32>
    %24 = arith.select %15, %16, %23 : vector<128x32xi1>, vector<128x32xf32>
    %25 = arith.select %13, %10, %24 : vector<128x32xi1>, vector<128x32xf32>
    %c0_10 = arith.constant 0 : index
    %c0_11 = arith.constant 0 : index
    %26 = vector.load %arg5[%c0_10, %c0_11] : memref<128x32xf32, #tpu.memory_space<vmem>>, vector<128x32xf32>
    tpu.vector_store %arg5[%c0_10, %c0_11], %25 {strides = array<i32>} : memref<128x32xf32, #tpu.memory_space<vmem>>, vector<128x32xf32>,
    return
  }
  func.func @transform_0(%arg0: i32, %arg1: memref<3xi32, #tpu.memory_space<smem>>) -> (i32, i32) {
    %c0_i32 = arith.constant 0 : i32
    %c0_i32_0 = arith.constant 0 : i32
    return %arg0, %c0_i32 : i32, i32
  }
  func.func @transform_1(%arg0: i32, %arg1: memref<3xi32, #tpu.memory_space<smem>>) -> (i32, i32, i32) {
    %0 = arith.index_cast %arg0 : i32 to index
    %1 = memref.load %arg1[%0] : memref<3xi32, #tpu.memory_space<smem>>
    %c0_i32 = arith.constant 0 : i32
    %c0_i32_0 = arith.constant 0 : i32
    %c0_i32_1 = arith.constant 0 : i32
    return %1, %c0_i32, %c0_i32_0 : i32, i32, i32
  }
  func.func @transform_2(%arg0: i32, %arg1: memref<3xi32, #tpu.memory_space<smem>>) -> (i32, i32, i32) {
    %0 = arith.index_cast %arg0 : i32 to index
    %1 = memref.load %arg1[%0] : memref<3xi32, #tpu.memory_space<smem>>
    %c0_i32 = arith.constant 0 : i32
    %c0_i32_0 = arith.constant 0 : i32
    %c0_i32_1 = arith.constant 0 : i32
    return %1, %c0_i32, %c0_i32_0 : i32, i32, i32
  }
  func.func @transform_3(%arg0: i32, %arg1: memref<3xi32, #tpu.memory_space<smem>>) -> (i32, i32) {
    %c0_i32 = arith.constant 0 : i32
    %c0_i32_0 = arith.constant 0 : i32
    return %arg0, %c0_i32 : i32, i32
  }
}

</mosaic_0001>

<bundles_post_ra>
// kernel: reverse.1
= control target key start
LH: loop header
LB: loop body
LE: loop exit
PB: predicated region body
PF: predicated region fallthrough
CT: control target
= control target key end

     0   :  { %v125_v3 = vmov 0.0   ;;  %s244_s0 = inlined_call_operand.vmem [shape: f32[3,3,64,16], index: 0, kind: input, shape index: {}]   ;;  %s245_s1 = inlined_call_operand.vmem [shape: bf16[3,3,64,16], index: 1, kind: output, shape index: {}]  }
   0x1   :  { %v90_v0 = vld [vmem:[%s244_s0 + $0x80] sm:$0xff]  ;;  %v91_v1 = vld [vmem:[%s244_s0 + $0x50] sm:$0xff]  ;;  %v106_v19 = vld [vmem:[%s244_s0 + $0x88] sm:$0xff] }
   0x2   :  { %v93_v2 = vld [vmem:[%s244_s0 + $0x20] sm:$0xff]  ;;  %v4_v4 = vpack.c.bf16 %v125_v3, %v90_v0  ;;  %v9_v5 = vpack.c.bf16 %v125_v3, %v91_v1  ;;  %v95_v7 = vld [vmem:[%s244_s0 + $0x70] sm:$0xff]  ;;  %v108_v20 = vld [vmem:[%s244_s0 + $0x58] sm:$0xff]  ;;  %v48_v22 = vpack.c.bf16 %v125_v3, %v106_v19 }
   0x3   :  { %v14_v6 = vpack.c.bf16 %v125_v3, %v93_v2  ;;  %v97_v8 = vld [vmem:[%s244_s0 + $0x40] sm:$0xff]  ;;  %v99_v9 = vld [vmem:[%s244_s0 + $0x10] sm:$0xff]  ;;  %v19_v10 = vpack.c.bf16 %v125_v3, %v95_v7  ;;  %v110_v21 = vld [vmem:[%s244_s0 + $0x28] sm:$0xff]  ;;  %v53_v23 = vpack.c.bf16 %v125_v3, %v108_v20 }
   0x4   :  { %v24_v11 = vpack.c.bf16 %v125_v3, %v97_v8  ;;  %v29_v12 = vpack.c.bf16 %v125_v3, %v99_v9  ;;  %v101_v13 = vld [vmem:[%s244_s0 + $0x60] sm:$0xff]  ;;  %v103_v14 = vld [vmem:[%s244_s0 + $0x30] sm:$0xff]  ;;  %5 = vst [vmem:[%s245_s1] sm:$0xf] %v4_v4  ;;  %92 = vst [vmem:[%s245_s1 + $0x18] sm:$0xf] %v9_v5  ;;  %v58_v24 = vpack.c.bf16 %v125_v3, %v110_v21 }
   0x5   :  { %v41_v15 = vld [vmem:[%s244_s0] sm:$0xff]  ;;  %94 = vst [vmem:[%s245_s1 + $0x30] sm:$0xf] %v14_v6  ;;  %v34_v16 = vpack.c.bf16 %v125_v3, %v101_v13  ;;  %v39_v17 = vpack.c.bf16 %v125_v3, %v103_v14  ;;  %96 = vst [vmem:[%s245_s1 + $0x8] sm:$0xf] %v19_v10  ;;  %v112_v25 = vld [vmem:[%s244_s0 + $0x78] sm:$0xff] }
   0x6   :  { %v43_v18 = vpack.c.bf16 %v125_v3, %v41_v15  ;;  %98 = vst [vmem:[%s245_s1 + $0x20] sm:$0xf] %v24_v11  ;;  %100 = vst [vmem:[%s245_s1 + $0x38] sm:$0xf] %v29_v12  ;;  %v114_v26 = vld [vmem:[%s244_s0 + $0x48] sm:$0xff]  ;;  %v116_v27 = vld [vmem:[%s244_s0 + $0x18] sm:$0xff]  ;;  %v63_v28 = vpack.c.bf16 %v125_v3, %v112_v25 }
   0x7   :  { %102 = vst [vmem:[%s245_s1 + $0x10] sm:$0xf] %v34_v16  ;;  %104 = vst [vmem:[%s245_s1 + $0x28] sm:$0xf] %v39_v17  ;;  %v68_v29 = vpack.c.bf16 %v125_v3, %v114_v26  ;;  %v73_v30 = vpack.c.bf16 %v125_v3, %v116_v27  ;;  %v118_v31 = vld [vmem:[%s244_s0 + $0x68] sm:$0xff]  ;;  %v120_v32 = vld [vmem:[%s244_s0 + $0x38] sm:$0xff] }
   0x8   :  { %105 = vst [vmem:[%s245_s1 + $0x40] sm:$0xf] %v43_v18  ;;  %v122_v33 = vld [vmem:[%s244_s0 + $0x8] sm:$0xff]  ;;  %107 = vst [vmem:[%s245_s1 + $0x4] sm:$0xf] %v48_v22  ;;  %v78_v34 = vpack.c.bf16 %v125_v3, %v118_v31  ;;  %v83_v35 = vpack.c.bf16 %v125_v3, %v120_v32 }
   0x9   :  { %109 = vst [vmem:[%s245_s1 + $0x1c] sm:$0xf] %v53_v23  ;;  %111 = vst [vmem:[%s245_s1 + $0x34] sm:$0xf] %v58_v24  ;;  %v88_v36 = vpack.c.bf16 %v125_v3, %v122_v33 }
   0xa   :  { %113 = vst [vmem:[%s245_s1 + $0xc] sm:$0xf] %v63_v28  ;;  %115 = vst [vmem:[%s245_s1 + $0x24] sm:$0xf] %v68_v29 }
   0xb   :  { %117 = vst [vmem:[%s245_s1 + $0x3c] sm:$0xf] %v73_v30  ;;  %119 = vst [vmem:[%s245_s1 + $0x14] sm:$0xf] %v78_v34 }
   0xc   :  { %121 = vst [vmem:[%s245_s1 + $0x2c] sm:$0xf] %v83_v35  ;;  %123 = vst [vmem:[%s245_s1 + $0x44] sm:$0xf] %v88_v36 }

// kernel: reverse.2
= control target key start
LH: loop header
LB: loop body
LE: loop exit
PB: predicated region body
PF: predicated region fallthrough
CT: control target
= control target key end

     0   :  { %v125_v3 = vmov 0.0   ;;  %s244_s0 = inlined_call_operand.vmem [shape: f32[3,3,16,16], index: 0, kind: input, shape index: {}]   ;;  %s245_s1 = inlined_call_operand.vmem [shape: bf16[3,3,16,16], index: 1, kind: output, shape index: {}]  }
   0x1   :  { %v90_v0 = vld [vmem:[%s244_s0 + $0x80] sm:$0xff]  ;;  %v91_v1 = vld [vmem:[%s244_s0 + $0x50] sm:$0xff]  ;;  %v106_v19 = vld [vmem:[%s244_s0 + $0x88] sm:$0xff] }
   0x2   :  { %v93_v2 = vld [vmem:[%s244_s0 + $0x20] sm:$0xff]  ;;  %v4_v4 = vpack.c.bf16 %v125_v3, %v90_v0  ;;  %v9_v5 = vpack.c.bf16 %v125_v3, %v91_v1  ;;  %v95_v7 = vld [vmem:[%s244_s0 + $0x70] sm:$0xff]  ;;  %v108_v20 = vld [vmem:[%s244_s0 + $0x58] sm:$0xff]  ;;  %v48_v22 = vpack.c.bf16 %v125_v3, %v106_v19 }
   0x3   :  { %v14_v6 = vpack.c.bf16 %v125_v3, %v93_v2  ;;  %v97_v8 = vld [vmem:[%s244_s0 + $0x40] sm:$0xff]  ;;  %v99_v9 = vld [vmem:[%s244_s0 + $0x10] sm:$0xff]  ;;  %v19_v10 = vpack.c.bf16 %v125_v3, %v95_v7  ;;  %v110_v21 = vld [vmem:[%s244_s0 + $0x28] sm:$0xff]  ;;  %v53_v23 = vpack.c.bf16 %v125_v3, %v108_v20 }
   0x4   :  { %v24_v11 = vpack.c.bf16 %v125_v3, %v97_v8  ;;  %v29_v12 = vpack.c.bf16 %v125_v3, %v99_v9  ;;  %v101_v13 = vld [vmem:[%s244_s0 + $0x60] sm:$0xff]  ;;  %v103_v14 = vld [vmem:[%s244_s0 + $0x30] sm:$0xff]  ;;  %5 = vst [vmem:[%s245_s1] sm:$0xf] %v4_v4  ;;  %92 = vst [vmem:[%s245_s1 + $0x18] sm:$0xf] %v9_v5  ;;  %v58_v24 = vpack.c.bf16 %v125_v3, %v110_v21 }
   0x5   :  { %v41_v15 = vld [vmem:[%s244_s0] sm:$0xff]  ;;  %94 = vst [vmem:[%s245_s1 + $0x30] sm:$0xf] %v14_v6  ;;  %v34_v16 = vpack.c.bf16 %v125_v3, %v101_v13  ;;  %v39_v17 = vpack.c.bf16 %v125_v3, %v103_v14  ;;  %96 = vst [vmem:[%s245_s1 + $0x8] sm:$0xf] %v19_v10  ;;  %v112_v25 = vld [vmem:[%s244_s0 + $0x78] sm:$0xff] }
   0x6   :  { %v43_v18 = vpack.c.bf16 %v125_v3, %v41_v15  ;;  %98 = vst [vmem:[%s245_s1 + $0x20] sm:$0xf] %v24_v11  ;;  %100 = vst [vmem:[%s245_s1 + $0x38] sm:$0xf] %v29_v12  ;;  %v114_v26 = vld [vmem:[%s244_s0 + $0x48] sm:$0xff]  ;;  %v116_v27 = vld [vmem:[%s244_s0 + $0x18] sm:$0xff]  ;;  %v63_v28 = vpack.c.bf16 %v125_v3, %v112_v25 }
   0x7   :  { %102 = vst [vmem:[%s245_s1 + $0x10] sm:$0xf] %v34_v16  ;;  %104 = vst [vmem:[%s245_s1 + $0x28] sm:$0xf] %v39_v17  ;;  %v68_v29 = vpack.c.bf16 %v125_v3, %v114_v26  ;;  %v73_v30 = vpack.c.bf16 %v125_v3, %v116_v27  ;;  %v118_v31 = vld [vmem:[%s244_s0 + $0x68] sm:$0xff]  ;;  %v120_v32 = vld [vmem:[%s244_s0 + $0x38] sm:$0xff] }
   0x8   :  { %105 = vst [vmem:[%s245_s1 + $0x40] sm:$0xf] %v43_v18  ;;  %v122_v33 = vld [vmem:[%s244_s0 + $0x8] sm:$0xff]  ;;  %107 = vst [vmem:[%s245_s1 + $0x4] sm:$0xf] %v48_v22  ;;  %v78_v34 = vpack.c.bf16 %v125_v3, %v118_v31  ;;  %v83_v35 = vpack.c.bf16 %v125_v3, %v120_v32 }
   0x9   :  { %109 = vst [vmem:[%s245_s1 + $0x1c] sm:$0xf] %v53_v23  ;;  %111 = vst [vmem:[%s245_s1 + $0x34] sm:$0xf] %v58_v24  ;;  %v88_v36 = vpack.c.bf16 %v125_v3, %v122_v33 }
   0xa   :  { %113 = vst [vmem:[%s245_s1 + $0xc] sm:$0xf] %v63_v28  ;;  %115 = vst [vmem:[%s245_s1 + $0x24] sm:$0xf] %v68_v29 }
   0xb   :  { %117 = vst [vmem:[%s245_s1 + $0x3c] sm:$0xf] %v73_v30  ;;  %119 = vst [vmem:[%s245_s1 + $0x14] sm:$0xf] %v78_v34 }
   0xc   :  { %121 = vst [vmem:[%s245_s1 + $0x2c] sm:$0xf] %v83_v35  ;;  %123 = vst [vmem:[%s245_s1 + $0x44] sm:$0xf] %v88_v36 }

// kernel: reverse
= control target key start
LH: loop header
LB: loop body
LE: loop exit
PB: predicated region body
PF: predicated region fallthrough
CT: control target
= control target key end

     0   :  { %v251_v3 = vmov 0.0   ;;  %s514_s0 = inlined_call_operand.vmem [shape: f32[3,3,64,32], index: 0, kind: input, shape index: {}]   ;;  %s515_s1 = inlined_call_operand.vmem [shape: bf16[3,3,64,32], index: 1, kind: output, shape index: {}]  }
   0x1   :  { %v180_v0 = vld [vmem:[%s514_s0 + $0x100] sm:$0xff]  ;;  %v196_v19 = vld [vmem:[%s514_s0 + $0x108] sm:$0xff]  ;;  %v214_v37 = vld [vmem:[%s514_s0 + $0x110] sm:$0xff] }
   0x2   :  { %v181_v1 = vld [vmem:[%s514_s0 + $0xa0] sm:$0xff]  ;;  %v4_v4 = vpack.c.bf16 %v251_v3, %v180_v0  ;;  %v198_v20 = vld [vmem:[%s514_s0 + $0xa8] sm:$0xff]  ;;  %v48_v22 = vpack.c.bf16 %v251_v3, %v196_v19  ;;  %v216_v38 = vld [vmem:[%s514_s0 + $0xb0] sm:$0xff]  ;;  %v93_v40 = vpack.c.bf16 %v251_v3, %v214_v37 }
   0x3   :  { %v183_v2 = vld [vmem:[%s514_s0 + $0x40] sm:$0xff]  ;;  %v9_v5 = vpack.c.bf16 %v251_v3, %v181_v1  ;;  %v200_v21 = vld [vmem:[%s514_s0 + $0x48] sm:$0xff]  ;;  %v53_v23 = vpack.c.bf16 %v251_v3, %v198_v20  ;;  %v218_v39 = vld [vmem:[%s514_s0 + $0x50] sm:$0xff]  ;;  %v98_v41 = vpack.c.bf16 %v251_v3, %v216_v38 }
   0x4   :  { %v14_v6 = vpack.c.bf16 %v251_v3, %v183_v2  ;;  %v185_v7 = vld [vmem:[%s514_s0 + $0xe0] sm:$0xff]  ;;  %5 = vst [vmem:[%s515_s1] sm:$0xf] %v4_v4  ;;  %v58_v24 = vpack.c.bf16 %v251_v3, %v200_v21  ;;  %v202_v25 = vld [vmem:[%s514_s0 + $0xe8] sm:$0xff]  ;;  %197 = vst [vmem:[%s515_s1 + $0x4] sm:$0xf] %v48_v22  ;;  %v103_v42 = vpack.c.bf16 %v251_v3, %v218_v39 }
   0x5   :  { %v187_v8 = vld [vmem:[%s514_s0 + $0x80] sm:$0xff]  ;;  %v19_v10 = vpack.c.bf16 %v251_v3, %v185_v7  ;;  %182 = vst [vmem:[%s515_s1 + $0x30] sm:$0xf] %v9_v5  ;;  %v204_v26 = vld [vmem:[%s514_s0 + $0x88] sm:$0xff]  ;;  %v63_v28 = vpack.c.bf16 %v251_v3, %v202_v25  ;;  %199 = vst [vmem:[%s515_s1 + $0x34] sm:$0xf] %v53_v23 }
   0x6   :  { %v189_v9 = vld [vmem:[%s514_s0 + $0x20] sm:$0xff]  ;;  %v24_v11 = vpack.c.bf16 %v251_v3, %v187_v8  ;;  %184 = vst [vmem:[%s515_s1 + $0x60] sm:$0xf] %v14_v6  ;;  %v206_v27 = vld [vmem:[%s514_s0 + $0x28] sm:$0xff]  ;;  %v68_v29 = vpack.c.bf16 %v251_v3, %v204_v26  ;;  %201 = vst [vmem:[%s515_s1 + $0x64] sm:$0xf] %v58_v24 }
   0x7   :  { %v29_v12 = vpack.c.bf16 %v251_v3, %v189_v9  ;;  %v191_v13 = vld [vmem:[%s514_s0 + $0xc0] sm:$0xff]  ;;  %186 = vst [vmem:[%s515_s1 + $0x10] sm:$0xf] %v19_v10  ;;  %v73_v30 = vpack.c.bf16 %v251_v3, %v206_v27  ;;  %v208_v31 = vld [vmem:[%s514_s0 + $0xc8] sm:$0xff]  ;;  %203 = vst [vmem:[%s515_s1 + $0x14] sm:$0xf] %v63_v28 }
   0x8   :  { %v193_v14 = vld [vmem:[%s514_s0 + $0x60] sm:$0xff]  ;;  %v34_v16 = vpack.c.bf16 %v251_v3, %v191_v13  ;;  %188 = vst [vmem:[%s515_s1 + $0x40] sm:$0xf] %v24_v11  ;;  %v210_v32 = vld [vmem:[%s514_s0 + $0x68] sm:$0xff]  ;;  %v78_v34 = vpack.c.bf16 %v251_v3, %v208_v31  ;;  %205 = vst [vmem:[%s515_s1 + $0x44] sm:$0xf] %v68_v29 }
   0x9   :  { %v41_v15 = vld [vmem:[%s514_s0] sm:$0xff]  ;;  %v39_v17 = vpack.c.bf16 %v251_v3, %v193_v14  ;;  %190 = vst [vmem:[%s515_s1 + $0x70] sm:$0xf] %v29_v12  ;;  %v212_v33 = vld [vmem:[%s514_s0 + $0x8] sm:$0xff]  ;;  %v83_v35 = vpack.c.bf16 %v251_v3, %v210_v32  ;;  %207 = vst [vmem:[%s515_s1 + $0x74] sm:$0xf] %v73_v30 }
   0xa   :  { %v43_v18 = vpack.c.bf16 %v251_v3, %v41_v15  ;;  %192 = vst [vmem:[%s515_s1 + $0x20] sm:$0xf] %v34_v16  ;;  %v88_v36 = vpack.c.bf16 %v251_v3, %v212_v33  ;;  %v220_v43 = vld [vmem:[%s514_s0 + $0xf0] sm:$0xff]  ;;  %209 = vst [vmem:[%s515_s1 + $0x24] sm:$0xf] %v78_v34  ;;  %v232_v55 = vld [vmem:[%s514_s0 + $0x118] sm:$0xff] }
   0xb   :  { %194 = vst [vmem:[%s515_s1 + $0x50] sm:$0xf] %v39_v17  ;;  %v222_v44 = vld [vmem:[%s514_s0 + $0x90] sm:$0xff]  ;;  %211 = vst [vmem:[%s515_s1 + $0x54] sm:$0xf] %v83_v35  ;;  %v108_v46 = vpack.c.bf16 %v251_v3, %v220_v43  ;;  %v234_v56 = vld [vmem:[%s514_s0 + $0xb8] sm:$0xff]  ;;  %v138_v58 = vpack.c.bf16 %v251_v3, %v232_v55 }
   0xc   :  { %195 = vst [vmem:[%s515_s1 + $0x80] sm:$0xf] %v43_v18  ;;  %v224_v45 = vld [vmem:[%s514_s0 + $0x30] sm:$0xff]  ;;  %213 = vst [vmem:[%s515_s1 + $0x84] sm:$0xf] %v88_v36  ;;  %v113_v47 = vpack.c.bf16 %v251_v3, %v222_v44  ;;  %v236_v57 = vld [vmem:[%s514_s0 + $0x58] sm:$0xff]  ;;  %v143_v59 = vpack.c.bf16 %v251_v3, %v234_v56 }
   0xd   :  { %v118_v48 = vpack.c.bf16 %v251_v3, %v224_v45  ;;  %v226_v49 = vld [vmem:[%s514_s0 + $0xd0] sm:$0xff]  ;;  %215 = vst [vmem:[%s515_s1 + $0x8] sm:$0xf] %v93_v40  ;;  %217 = vst [vmem:[%s515_s1 + $0x38] sm:$0xf] %v98_v41  ;;  %v148_v60 = vpack.c.bf16 %v251_v3, %v236_v57  ;;  %v238_v61 = vld [vmem:[%s514_s0 + $0xf8] sm:$0xff] }
   0xe   :  { %v228_v50 = vld [vmem:[%s514_s0 + $0x70] sm:$0xff]  ;;  %219 = vst [vmem:[%s515_s1 + $0x68] sm:$0xf] %v103_v42  ;;  %v123_v52 = vpack.c.bf16 %v251_v3, %v226_v49  ;;  %221 = vst [vmem:[%s515_s1 + $0x18] sm:$0xf] %v108_v46  ;;  %v240_v62 = vld [vmem:[%s514_s0 + $0x98] sm:$0xff]  ;;  %v153_v0 = vpack.c.bf16 %v251_v3, %v238_v61 }
   0xf   :  { %v230_v51 = vld [vmem:[%s514_s0 + $0x10] sm:$0xff]  ;;  %v128_v53 = vpack.c.bf16 %v251_v3, %v228_v50  ;;  %223 = vst [vmem:[%s515_s1 + $0x48] sm:$0xf] %v113_v47  ;;  %225 = vst [vmem:[%s515_s1 + $0x78] sm:$0xf] %v118_v48  ;;  %v242_v63 = vld [vmem:[%s514_s0 + $0x38] sm:$0xff]  ;;  %v158_v1 = vpack.c.bf16 %v251_v3, %v240_v62 }
  0x10   :  { %v133_v54 = vpack.c.bf16 %v251_v3, %v230_v51  ;;  %227 = vst [vmem:[%s515_s1 + $0x28] sm:$0xf] %v123_v52  ;;  %v163_v2 = vpack.c.bf16 %v251_v3, %v242_v63  ;;  %v244_v4 = vld [vmem:[%s514_s0 + $0xd8] sm:$0xff]  ;;  %233 = vst [vmem:[%s515_s1 + $0xc] sm:$0xf] %v138_v58 }
  0x11   :  { %229 = vst [vmem:[%s515_s1 + $0x58] sm:$0xf] %v128_v53  ;;  %v246_v5 = vld [vmem:[%s514_s0 + $0x78] sm:$0xff]  ;;  %235 = vst [vmem:[%s515_s1 + $0x3c] sm:$0xf] %v143_v59  ;;  %v168_v7 = vpack.c.bf16 %v251_v3, %v244_v4 }
  0x12   :  { %231 = vst [vmem:[%s515_s1 + $0x88] sm:$0xf] %v133_v54  ;;  %v248_v6 = vld [vmem:[%s514_s0 + $0x18] sm:$0xff]  ;;  %237 = vst [vmem:[%s515_s1 + $0x6c] sm:$0xf] %v148_v60  ;;  %v173_v8 = vpack.c.bf16 %v251_v3, %v246_v5 }
  0x13   :  { %v178_v3 = vpack.c.bf16 %v251_v3, %v248_v6  ;;  %239 = vst [vmem:[%s515_s1 + $0x1c] sm:$0xf] %v153_v0  ;;  %241 = vst [vmem:[%s515_s1 + $0x4c] sm:$0xf] %v158_v1 }
  0x14   :  { %243 = vst [vmem:[%s515_s1 + $0x7c] sm:$0xf] %v163_v2  ;;  %245 = vst [vmem:[%s515_s1 + $0x2c] sm:$0xf] %v168_v7 }
  0x15   :  { %247 = vst [vmem:[%s515_s1 + $0x5c] sm:$0xf] %v173_v8  ;;  %249 = vst [vmem:[%s515_s1 + $0x8c] sm:$0xf] %v178_v3 }

// kernel: retinababyface_forward.1
= control target key start
LH: loop header
LB: loop body
LE: loop exit
PB: predicated region body
PF: predicated region fallthrough
CT: control target
= control target key end

     0   :  { %s1206_s0 = inlined_call_operand.vmem [shape: s32[3], index: 0, kind: input, shape index: {}]   ;;  %s1207_s1 = inlined_call_operand.vmem [shape: f32[384,64], index: 1, kind: input, shape index: {}]   ;;  %s1208_s2 = inlined_call_operand.vmem [shape: bf16[3,64,32], index: 2, kind: input, shape index: {}]   ;;  %s1209_s3 = inlined_call_operand.vmem [shape: f32[3,1,32], index: 3, kind: input, shape index: {}]   ;;  %s1210_s4 = inlined_call_operand.vmem [shape: f32[384,32], index: 4, kind: output, shape index: {}]  }
   0x1   :  { %s9_s17 = sshll.u32 %s1206_s0, 4  ;;  %s10_s17 = int_to_ptr.vmem [resolvable:$true] %s9_s17 }
   0x2   :  { %s885_s18 = scalar_lea.vmem %s10_s17, 16  ;;  %p890_p1 = scmp.lt.s32.totalorder %s10_s17, %s10_s17 }
   0x3   :  { %p886_p0 = scmp.ne.s32.totalorder %s10_s17, %s885_s18  ;;  %p891_p2 = scmp.lt.s32.totalorder %s885_s18, %s885_s18 }
   0x5   :  { %p892_p3 = por %p891_p2, %p890_p1 }
   0x7   :  { %p893_p4 = pnand %p892_p3, %p886_p0 }
   0x9   :  { %896 = shalt.err (!%p893_p4)  }
   0xa   :  { %s907_s19 = smov [#allocation3]  }
   0xb   :  { %12 = dma.vmem_to_smem %s10_s17, 16, %s907_s19, [#allocation2] }
   0xc   :  { %901 = dma.done.wait [#allocation2], 16 }
   0xd   :  { %902 = vsyncadd [#allocation2], 4294967280 }
   0xe   :  { %14 = sfence }
   0xf   :  { %s936_s20 = smov 0  }
  0x10 LB: > { %s942_s0 = sadd.s32 4294967295, %s905_s20   ;;  %p693_p5 = scmp.ge.s32.totalorder %s905_s20, 1  ;;  %s905_s20 = sphi %s936_s20, %s20_s20  }
  0x11   : > { %p171_p6 = scmp.lt.s32.totalorder %s905_s20, 4 }
  0x13   : > { %p172_p7 = pnand %p693_p5, %p171_p6 }
  0x14   : > { %s211_s21 = sld [smem:[#allocation3 + %s942_s0]] (!%p172_p7)  ;;  %s694_s22 = sshll.u32 (!%p172_p7), %s942_s0, 4  ;;  %vm309_vm0 = vcmask (!%p172_p7), 523264   ;;  %vm595_vm3 = vcmask (!%p172_p7), 261120  }
  0x15   : > { %175 = sbr.rel (%p172_p7) target bundleno = 335 (0x14f), region = 32  ;;  %p206_p8 = scmp.lt.s32.totalorder (!%p172_p7), %s694_s22, 47 }
  0x16   : > { %s218_s5 = sld [smem:[#allocation3 + %s942_s0]] (!%p172_p7) }
  0x1a   : > { %p212_p9 = scmp.lt.s32.totalorder (!%p172_p7), %s211_s21, 2 }
  0x1c   : > { %s1212_s22 = smov (!%p206_p8, %s694_s22), 47  ;;  %s1214_s21 = smov (!%p212_p9, %s211_s21), 2 }
  0x1d   : > { %s695_s23 = sshll.u32 %s1212_s22, 3  ;;  %s731_s27 = sshll.u32 %s1214_s21, 5 }
  0x1e   : > { %s956_s26 = scalar_lea.vmem %s1207_s1, %s695_s23  ;;  %s216_s30 = scalar_lea.vmem %s1208_s2, %s731_s27 }
  0x1f   : > { %v230_v0 = vld [vmem:[%s956_s26] sm:$0xff]  ;;  %v231_v1 = vld [vmem:[%s956_s26 + $0x8] sm:$0xff]  ;;  %v787_v12 = vld [vmem:[%s216_s30 + $0x10] sm:$0xff]   ;;  %p219_p10 = scmp.lt.s32.totalorder %s218_s5, 2  ;;  %s1062_s11 = scalar_lea.vmem %s1210_s4, %s695_s23 }
  0x20   : > { %v238_v2 = vld [vmem:[%s956_s26 + $0x40] sm:$0xff]  ;;  %v246_v3 = vmax.f32 %v230_v0, 0.0  ;;  %v247_v4 = vmax.f32 %v231_v1, 0.0  ;;  %v239_v5 = vld [vmem:[%s956_s26 + $0x48] sm:$0xff]  ;;  %v232_v13 = vld [vmem:[%s956_s26 + $0x10] sm:$0xff] }
  0x21   : > { %v254_v6 = vmax.f32 %v238_v2, 0.0  ;;  %v255_v7 = vmax.f32 %v239_v5, 0.0  ;;  %v785_v10 = vld [vmem:[%s216_s30] sm:$0xff]   ;;  %v786_v11 = vld [vmem:[%s216_s30 + $0x8] sm:$0xff]   ;;  %v233_v14 = vld [vmem:[%s956_s26 + $0x18] sm:$0xff]  ;;  %v248_v22 = vmax.f32 %v232_v13, 0.0 }
  0x22   : > { %v262_v8 = vpack.c.bf16 %v247_v4, %v246_v3  ;;  %744 = vmatprep.subr.bf16.mxu0 %v785_v10  ;;  %768 = vmatprep.subr.bf16.mxu1 %v785_v10  ;;  %v240_v15 = vld [vmem:[%s956_s26 + $0x50] sm:$0xff]  ;;  %v241_v16 = vld [vmem:[%s956_s26 + $0x58] sm:$0xff]  ;;  %v234_v17 = vld [vmem:[%s956_s26 + $0x20] sm:$0xff]  ;;  %v249_v23 = vmax.f32 %v233_v14, 0.0  ;;  %s1216_s5 = smov (!%p219_p10, %s218_s5), 2 }
  0x23   : > { %v266_v9 = vpack.c.bf16 %v255_v7, %v254_v6  ;;  %745 = vmatpush3.bf16.msra.mxu0 %v785_v10  ;;  %772 = vmatpush3.bf16.msra.mxu1 %v785_v10  ;;  %v235_v18 = vld [vmem:[%s956_s26 + $0x28] sm:$0xff]  ;;  %v788_v19 = vld [vmem:[%s216_s30 + $0x18] sm:$0xff]   ;;  %v242_v20 = vld [vmem:[%s956_s26 + $0x60] sm:$0xff]  ;;  %v256_v24 = vmax.f32 %v240_v15, 0.0  ;;  %v257_v25 = vmax.f32 %v241_v16, 0.0  ;;  %v250_v26 = vmax.f32 %v234_v17, 0.0  ;;  %s221_s8 = scalar_lea.vmem %s1209_s3, %s1216_s5 }
  0x24   : > { %752 = vmatprep.mubr.msk.bf16.mxu0 %vm309_vm0, %v262_v8  ;;  %746 = vmatprep.subr.bf16.mxu0 %v786_v11  ;;  %v243_v21 = vld [vmem:[%s956_s26 + $0x68] sm:$0xff]  ;;  %v251_v27 = vmax.f32 %v235_v18, 0.0  ;;  %v258_v28 = vmax.f32 %v242_v20, 0.0  ;;  %v263_v30 = vpack.c.bf16 %v249_v23, %v248_v22  ;;  %v236_v32 = vld [vmem:[%s956_s26 + $0x30] sm:$0xff]  ;;  %v237_v35 = vld [vmem:[%s956_s26 + $0x38] sm:$0xff] }
  0x25   : > { %760 = vmatprep.mubr.msk.bf16.mxu1 %vm309_vm0, %v266_v9  ;;  %769 = vmatprep.subr.bf16.mxu1 %v786_v11  ;;  %v259_v29 = vmax.f32 %v243_v21, 0.0  ;;  %v267_v31 = vpack.c.bf16 %v257_v25, %v256_v24  ;;  %v244_v36 = vld [vmem:[%s956_s26 + $0x70] sm:$0xff]  ;;  %v245_v37 = vld [vmem:[%s956_s26 + $0x78] sm:$0xff]  ;;  %v252_v38 = vmax.f32 %v236_v32, 0.0  ;;  %v253_v39 = vmax.f32 %v237_v35, 0.0 }
  0x26   : > { %v264_v33 = vpack.c.bf16 %v251_v27, %v250_v26  ;;  %v260_v40 = vmax.f32 %v244_v36, 0.0  ;;  %v261_v41 = vmax.f32 %v245_v37, 0.0  ;;  %v989_v44 = vld [vmem:[%s221_s8] ss:$0 sm:$0xff]  ;;  %v431_v21 = vlaneseq }
  0x27   : > { %747 = vmatpush3.bf16.msra.mxu0 %v786_v11  ;;  %773 = vmatpush3.bf16.msra.mxu1 %v786_v11  ;;  %v268_v34 = vpack.c.bf16 %v259_v29, %v258_v28  ;;  %v265_v42 = vpack.c.bf16 %v253_v39, %v252_v38 }
  0x28   : > { %748 = vmatprep.subr.bf16.mxu0 %v787_v12  ;;  %770 = vmatprep.subr.bf16.mxu1 %v787_v12  ;;  %v269_v43 = vpack.c.bf16 %v261_v41, %v260_v40 }
  0x2b   : > { %749 = vmatpush3.bf16.msra.mxu0 %v787_v12  ;;  %774 = vmatpush3.bf16.msra.mxu1 %v787_v12 }
  0x2c   : > { %750 = vmatprep.subr.bf16.mxu0 %v788_v19  ;;  %771 = vmatprep.subr.bf16.mxu1 %v788_v19 }
  0x2f   : > { %751 = vmatpush3.bf16.msra.mxu0 %v788_v19  ;;  %775 = vmatpush3.bf16.msra.mxu1 %v788_v19 }
  0x32   : > { %753 = vmatmul.mubr.msk.bf16.vlgmr.msra.gmra.mrb[0].mxu0 %vm309_vm0, %v263_v30  ;;  %761 = vmatmul.mubr.msk.bf16.vlgmr.msra.gmra.mrb[0].mxu1 %vm309_vm0, %v267_v31  ;;  %v1044_v31 = vand.u32 127, %v431_v21 }
  0x33   : > { %756 = vmatprep.mubr.msk.bf16.mxu0 %vm309_vm0, %v264_v33  ;;  %764 = vmatprep.mubr.msk.bf16.mxu1 %vm309_vm0, %v268_v34 }
  0x34   : > { %vm434_vm1 = vcmp.lt.s32.totalorder %v1044_v31, 28  ;;  %vm433_vm2 = vcmp.lt.s32.totalorder %v1044_v31, 12 }
  0x3a   : > { %757 = vmatmul.mubr.msk.bf16.gmra.mrb[4].mxu0 %vm309_vm0, %v265_v42  ;;  %765 = vmatmul.mubr.msk.bf16.gmra.mrb[4].mxu1 %vm309_vm0, %v269_v43 }
 0x105   : > { %v754_v45 = vpop.f32.mrb[0].mxu0  ;;  %v762_v46 = vpop.f32.mrb[0].mxu1 }
 0x106   : > { %v992_v47 = vadd.f32 %v754_v45, %v989_v44  ;;  %v995_v48 = vadd.f32 %v762_v46, %v989_v44  ;;  %v368_v49 = vpop.f32.mrb[1].mxu0  ;;  %v400_v50 = vpop.f32.mrb[1].mxu1 }
 0x107   : > { %v998_v51 = vadd.f32 %v989_v44, %v368_v49  ;;  %v1001_v52 = vadd.f32 %v989_v44, %v400_v50  ;;  %v755_v53 = vpop.f32.mrb[2].mxu0  ;;  %v763_v54 = vpop.f32.mrb[2].mxu1 }
 0x108   : > { %v715_v55 = vmul.f32 -1.442695, %v992_v47  ;;  %v723_v56 = vmul.f32 -1.442695, %v995_v48  ;;  %v371_v57 = vpop.f32.mrb[3].mxu0  ;;  %v403_v58 = vpop.f32.mrb[3].mxu1  ;;  %v1007_v60 = vadd.f32 %v755_v53, %v989_v44  ;;  %v1011_v62 = vadd.f32 %v763_v54, %v989_v44 }
 0x109   : > { %v713_v59 = vmul.f32 -1.442695, %v998_v51  ;;  %v721_v61 = vmul.f32 -1.442695, %v1001_v52  ;;  %v1015_v0 = vadd.f32 %v989_v44, %v371_v57  ;;  %v1027_v11 = vadd.f32 %v989_v44, %v403_v58 }
 0x10a   : > { %789 = vpow2.f32 %v715_v55  ;;  %v716_v63 = vmul.f32 -1.442695, %v1007_v60  ;;  %v724_v5 = vmul.f32 -1.442695, %v1011_v62 }
 0x10b   : > { %791 = vpow2.f32 %v723_v56  ;;  %v714_v10 = vmul.f32 -1.442695, %v1015_v0  ;;  %v722_v15 = vmul.f32 -1.442695, %v1027_v11 }
 0x10c   : > { %793 = vpow2.f32 %v713_v59 }
 0x10d   : > { %v758_v1 = vpop.f32.mrb[4].mxu0  ;;  %v766_v2 = vpop.f32.mrb[4].mxu1  ;;  %795 = vpow2.f32 %v721_v61 }
 0x10e   : > { %v384_v3 = vpop.f32.mrb[5].mxu0  ;;  %v416_v4 = vpop.f32.mrb[5].mxu1  ;;  %797 = vtanh.f32 %v992_v47  ;;  %v1033_v16 = vadd.f32 %v758_v1, %v989_v44  ;;  %v1038_v23 = vadd.f32 %v766_v2, %v989_v44 }
 0x10f   : > { %v759_v6 = vpop.f32.mrb[6].mxu0  ;;  %v1018_v7 = vpop.f32.mrb[6].mxu1  ;;  %799 = vpow2.f32 %v716_v63  ;;  %v1042_v29 = vadd.f32 %v989_v44, %v384_v3  ;;  %v1049_v36 = vadd.f32 %v989_v44, %v416_v4 }
 0x110   : > { %v1021_v8 = vpop.f32.mrb[7].mxu0  ;;  %v1023_v9 = vpop.f32.mrb[7].mxu1  ;;  %801 = vtanh.f32 %v995_v48  ;;  %v719_v22 = vmul.f32 -1.442695, %v1033_v16  ;;  %v727_v32 = vmul.f32 -1.442695, %v1038_v23  ;;  %v1054_v41 = vadd.f32 %v759_v6, %v989_v44 }
 0x111   : > { %803 = vpow2.f32 %v724_v5  ;;  %v717_v39 = vmul.f32 -1.442695, %v1042_v29  ;;  %v725_v49 = vmul.f32 -1.442695, %v1049_v36  ;;  %v1070_v55 = vadd.f32 %v1018_v7, %v989_v44 }
 0x112   : > { %805 = vtanh.f32 %v998_v51  ;;  %v720_v61 = vmul.f32 -1.442695, %v1054_v41  ;;  %v1089_v4 = vadd.f32 %v989_v44, %v1021_v8 }
 0x113   : > { %807 = vpow2.f32 %v714_v10  ;;  %v728_v7 = vmul.f32 -1.442695, %v1070_v55 }
 0x114   : > { %v790_v12 = vpop.eup %789  ;;  %809 = vtanh.f32 %v1001_v52 }
 0x115   : > { %v792_v13 = vpop.eup %791  ;;  %v501_v14 = vadd.f32 1.0, %v790_v12 }
 0x116   : > { %v509_v17 = vadd.f32 1.0, %v792_v13  ;;  %v794_v18 = vpop.eup %793 }
 0x117   : > { %811 = vrcp.f32 %v501_v14  ;;  %v499_v19 = vadd.f32 1.0, %v794_v18  ;;  %v796_v20 = vpop.eup %795 }
 0x118   : > { %813 = vrcp.f32 %v509_v17  ;;  %v798_v24 = vpop.eup %797  ;;  %v507_v25 = vadd.f32 1.0, %v796_v20 }
 0x119   : > { %815 = vpow2.f32 %v722_v15  ;;  %v800_v26 = vpop.eup %799 }
 0x11a   : > { %817 = vrcp.f32 %v499_v19  ;;  %v802_v27 = vpop.eup %801  ;;  %v502_v28 = vadd.f32 1.0, %v800_v26  ;;  %v718_v19 = vmul.f32 -1.442695, %v1089_v4 }
 0x11b   : > { %819 = vtanh.f32 %v1007_v60  ;;  %v804_v30 = vpop.eup %803 }
 0x11c   : > { %821 = vrcp.f32 %v507_v25  ;;  %v806_v33 = vpop.eup %805  ;;  %v510_v34 = vadd.f32 1.0, %v804_v30 }
 0x11d   : > { %823 = vpow2.f32 %v719_v22  ;;  %v808_v35 = vpop.eup %807 }
 0x11e   : > { %825 = vrcp.f32 %v502_v28  ;;  %v810_v37 = vpop.eup %809  ;;  %v500_v38 = vadd.f32 1.0, %v808_v35 }
 0x11f   : > { %827 = vtanh.f32 %v1011_v62 }
 0x120   : > { %829 = vrcp.f32 %v510_v34 }
 0x121   : > { %v812_v40 = vpop.eup %811  ;;  %831 = vpow2.f32 %v727_v32 }
 0x122   : > { %v814_v42 = vpop.eup %813  ;;  %v549_v43 = vmul.f32 6.2831855, %v812_v40  ;;  %833 = vrcp.f32 %v500_v38 }
 0x123   : > { %v816_v45 = vpop.eup %815  ;;  %v557_v46 = vmul.f32 6.2831855, %v814_v42  ;;  %835 = vtanh.f32 %v1015_v0 }
 0x124   : > { %v818_v50 = vpop.eup %817  ;;  %v565_v53 = vsel %vm434_vm1, %v798_v24, %v549_v43  ;;  %v508_v54 = vadd.f32 1.0, %v816_v45  ;;  %837 = vpow2.f32 %v717_v39 }
 0x125   : > { %v820_v56 = vpop.eup %819  ;;  %v581_v57 = vsel %vm433_vm2, %v992_v47, %v565_v53  ;;  %v573_v58 = vsel %vm434_vm1, %v802_v27, %v557_v46  ;;  %v547_v59 = vmul.f32 6.2831855, %v818_v50 }
 0x126   : > { %v822_v63 = vpop.eup %821  ;;  %598 = vst.msk [vmem:[%s1062_s11 + $0x10] sm:$0xff] %vm595_vm3, %v581_v57  ;;  %v589_v1 = vsel %vm433_vm2, %v995_v48, %v573_v58  ;;  %839 = vrcp.f32 %v508_v54 }
 0x127   : > { %v824_v2 = vpop.eup %823  ;;  %606 = vst.msk [vmem:[%s1062_s11 + $0x50] sm:$0xff] %vm595_vm3, %v589_v1  ;;  %v563_v47 = vsel %vm434_vm1, %v806_v33, %v547_v59  ;;  %v555_v3 = vmul.f32 6.2831855, %v822_v63  ;;  %841 = vpow2.f32 %v725_v49 }
 0x128   : > { %v826_v5 = vpop.eup %825  ;;  %v579_v6 = vsel %vm433_vm2, %v998_v51, %v563_v47  ;;  %843 = vtanh.f32 %v1027_v11  ;;  %v505_v48 = vadd.f32 1.0, %v824_v2  ;;  %v1105_v51 = vadd.f32 %v989_v44, %v1023_v9 }
 0x129   : > { %v828_v10 = vpop.eup %827  ;;  %596 = vst.msk [vmem:[%s1062_s11] sm:$0xff] %vm595_vm3, %v579_v6  ;;  %v571_v12 = vsel %vm434_vm1, %v810_v37, %v555_v3  ;;  %v550_v13 = vmul.f32 6.2831855, %v826_v5  ;;  %845 = vpow2.f32 %v720_v61 }
 0x12a   : > { %v830_v8 = vpop.eup %829  ;;  %v587_v14 = vsel %vm433_vm2, %v1001_v52, %v571_v12  ;;  %847 = vrcp.f32 %v505_v48  ;;  %v726_v26 = vmul.f32 -1.442695, %v1105_v51 }
 0x12b   : > { %v832_v15 = vpop.eup %831  ;;  %604 = vst.msk [vmem:[%s1062_s11 + $0x40] sm:$0xff] %vm595_vm3, %v587_v14  ;;  %v566_v17 = vsel %vm434_vm1, %v820_v56, %v550_v13  ;;  %v558_v18 = vmul.f32 6.2831855, %v830_v8  ;;  %849 = vtanh.f32 %v1033_v16 }
 0x12c   : > { %v834_v20 = vpop.eup %833  ;;  %v582_v52 = vsel %vm433_vm2, %v1007_v60, %v566_v17  ;;  %v513_v21 = vadd.f32 1.0, %v832_v15  ;;  %851 = vpow2.f32 %v728_v7 }
 0x12d   : > { %v836_v44 = vpop.eup %835  ;;  %599 = vst.msk [vmem:[%s1062_s11 + $0x18] sm:$0xff] %vm595_vm3, %v582_v52  ;;  %v574_v9 = vsel %vm434_vm1, %v828_v10, %v558_v18  ;;  %v548_v22 = vmul.f32 6.2831855, %v834_v20 }
 0x12e   : > { %v838_v24 = vpop.eup %837  ;;  %v590_v25 = vsel %vm433_vm2, %v1011_v62, %v574_v9  ;;  %853 = vrcp.f32 %v513_v21 }
 0x12f   : > { %607 = vst.msk [vmem:[%s1062_s11 + $0x58] sm:$0xff] %vm595_vm3, %v590_v25  ;;  %v564_v60 = vsel %vm434_vm1, %v836_v44, %v548_v22  ;;  %v503_v27 = vadd.f32 1.0, %v838_v24  ;;  %855 = vpow2.f32 %v718_v19 }
 0x130   : > { %v840_v28 = vpop.eup %839  ;;  %v580_v30 = vsel %vm433_vm2, %v1015_v0, %v564_v60  ;;  %857 = vtanh.f32 %v1038_v23 }
 0x131   : > { %v842_v32 = vpop.eup %841  ;;  %597 = vst.msk [vmem:[%s1062_s11 + $0x8] sm:$0xff] %vm595_vm3, %v580_v30  ;;  %v556_v62 = vmul.f32 6.2831855, %v840_v28  ;;  %859 = vrcp.f32 %v503_v27 }
 0x132   : > { %v844_v33 = vpop.eup %843  ;;  %v511_v34 = vadd.f32 1.0, %v842_v32  ;;  %861 = vpow2.f32 %v726_v26 }
 0x133   : > { %v846_v35 = vpop.eup %845  ;;  %v572_v37 = vsel %vm434_vm1, %v844_v33, %v556_v62  ;;  %863 = vtanh.f32 %v1042_v29 }
 0x134   : > { %v848_v38 = vpop.eup %847  ;;  %v588_v0 = vsel %vm433_vm2, %v1027_v11, %v572_v37  ;;  %865 = vrcp.f32 %v511_v34  ;;  %v506_v39 = vadd.f32 1.0, %v846_v35 }
 0x135   : > { %v850_v40 = vpop.eup %849  ;;  %605 = vst.msk [vmem:[%s1062_s11 + $0x48] sm:$0xff] %vm595_vm3, %v588_v0  ;;  %v553_v42 = vmul.f32 6.2831855, %v848_v38  ;;  %867 = vtanh.f32 %v1049_v36 }
 0x136   : > { %v852_v43 = vpop.eup %851  ;;  %869 = vrcp.f32 %v506_v39 }
 0x137   : > { %v569_v45 = vsel %vm434_vm1, %v850_v40, %v553_v42  ;;  %v514_v46 = vadd.f32 1.0, %v852_v43  ;;  %871 = vtanh.f32 %v1054_v41 }
 0x138   : > { %v854_v49 = vpop.eup %853  ;;  %v585_v50 = vsel %vm433_vm2, %v1033_v16, %v569_v45 }
 0x139   : > { %v856_v11 = vpop.eup %855  ;;  %602 = vst.msk [vmem:[%s1062_s11 + $0x30] sm:$0xff] %vm595_vm3, %v585_v50  ;;  %v561_v53 = vmul.f32 6.2831855, %v854_v49  ;;  %873 = vrcp.f32 %v514_v46 }
 0x13a   : > { %v858_v54 = vpop.eup %857  ;;  %v504_v56 = vadd.f32 1.0, %v856_v11  ;;  %875 = vtanh.f32 %v1070_v55 }
 0x13b   : > { %v860_v57 = vpop.eup %859  ;;  %v577_v58 = vsel %vm434_vm1, %v858_v54, %v561_v53 }
 0x13c   : > { %v862_v59 = vpop.eup %861  ;;  %v593_v16 = vsel %vm433_vm2, %v1038_v23, %v577_v58  ;;  %v551_v61 = vmul.f32 6.2831855, %v860_v57  ;;  %877 = vrcp.f32 %v504_v56 }
 0x13d   : > { %v864_v63 = vpop.eup %863  ;;  %610 = vst.msk [vmem:[%s1062_s11 + $0x70] sm:$0xff] %vm595_vm3, %v593_v16  ;;  %v512_v1 = vadd.f32 1.0, %v862_v59  ;;  %879 = vtanh.f32 %v1089_v4 }
 0x13e   : > { %v866_v2 = vpop.eup %865  ;;  %v567_v47 = vsel %vm434_vm1, %v864_v63, %v551_v61 }
 0x13f   : > { %v868_v3 = vpop.eup %867  ;;  %v583_v5 = vsel %vm433_vm2, %v1042_v29, %v567_v47  ;;  %v559_v23 = vmul.f32 6.2831855, %v866_v2  ;;  %881 = vrcp.f32 %v512_v1 }
 0x140   : > { %v870_v6 = vpop.eup %869  ;;  %600 = vst.msk [vmem:[%s1062_s11 + $0x20] sm:$0xff] %vm595_vm3, %v583_v5  ;;  %883 = vtanh.f32 %v1105_v51 }
 0x141   : > { %v575_v48 = vsel %vm434_vm1, %v868_v3, %v559_v23  ;;  %v554_v7 = vmul.f32 6.2831855, %v870_v6  ;;  %v872_v10 = vpop.eup %871 }
 0x142   : > { %v591_v12 = vsel %vm433_vm2, %v1049_v36, %v575_v48 }
 0x143   : > { %v874_v13 = vpop.eup %873  ;;  %608 = vst.msk [vmem:[%s1062_s11 + $0x60] sm:$0xff] %vm595_vm3, %v591_v12  ;;  %v570_v29 = vsel %vm434_vm1, %v872_v10, %v554_v7 }
 0x144   : > { %v586_v8 = vsel %vm433_vm2, %v1054_v41, %v570_v29  ;;  %v562_v14 = vmul.f32 6.2831855, %v874_v13  ;;  %v876_v15 = vpop.eup %875 }
 0x145   : > { %603 = vst.msk [vmem:[%s1062_s11 + $0x38] sm:$0xff] %vm595_vm3, %v586_v8 }
 0x146   : > { %v878_v17 = vpop.eup %877  ;;  %v578_v36 = vsel %vm434_vm1, %v876_v15, %v562_v14 }
 0x147   : > { %v594_v18 = vsel %vm433_vm2, %v1070_v55, %v578_v36  ;;  %v552_v19 = vmul.f32 6.2831855, %v878_v17  ;;  %v880_v20 = vpop.eup %879 }
 0x148   : > { %611 = vst.msk [vmem:[%s1062_s11 + $0x78] sm:$0xff] %vm595_vm3, %v594_v18 }
 0x149   : > { %v882_v52 = vpop.eup %881  ;;  %v568_v41 = vsel %vm434_vm1, %v880_v20, %v552_v19 }
 0x14a   : > { %v584_v21 = vsel %vm433_vm2, %v1089_v4, %v568_v41  ;;  %v560_v44 = vmul.f32 6.2831855, %v882_v52  ;;  %v884_v9 = vpop.eup %883 }
 0x14b   : > { %601 = vst.msk [vmem:[%s1062_s11 + $0x28] sm:$0xff] %vm595_vm3, %v584_v21 }
 0x14c   : > { %v576_v22 = vsel %vm434_vm1, %v884_v9, %v560_v44 }
 0x14d   : > { %v592_v55 = vsel %vm433_vm2, %v1105_v51, %v576_v22 }
 0x14e   : > { %609 = vst.msk [vmem:[%s1062_s11 + $0x68] sm:$0xff] %vm595_vm3, %v592_v55 }
 0x14f PF: > { %s20_s20 = sadd.s32 1, %s905_s20  }
 0x150   : > { %p17_p11 = scmp.ge.s32.totalorder %s20_s20, 5  }
 0x152   :  { %19 = sbr.rel (!%p17_p11) target bundleno = 16 (0x10), region = 68 }

</bundles_post_ra>
